<compile_context>
chip_gen: v6e
topology: v6e:2x2x1
jax: 0.10.0
libtpu: 0.0.40
codegen_flags: <defaults>
</compile_context>

<pallas_src>
import functools

import jax
import jax.numpy as jnp
from jax import lax
from jax.experimental import pallas as pl
from jax.experimental.pallas import tpu as pltpu


_VMEM = pl.BlockSpec(memory_space=pltpu.MemorySpace.VMEM)


# ----------------------------------------------------------------------------
# Kernel 1: plain forward path (lr_coef is None)
#   z_l     = alpha_{l-1} @ w_l.T
#   alpha_l = z_l if output layer else clamp(z_l, 0, clip)
# ----------------------------------------------------------------------------
def _linear_clamp_kernel(x_ref, w_ref, o_ref, *, is_output_layer, clip):
    x = x_ref[...]                                    # (B, in)
    w = w_ref[...]                                    # (out, in)
    # x @ w.T without materializing a transpose: contract last dims of both.
    z = lax.dot_general(x, w, dimension_numbers=(((1,), (1,)), ((), ())),
                        preferred_element_type=jnp.float32)   # (B, out)  MXU
    if not is_output_layer:
        z = jnp.clip(z, 0.0, clip)
    o_ref[...] = z.astype(o_ref.dtype)


# ----------------------------------------------------------------------------
# Kernel 2: fused forward + self-optimizing update (lr_coef given)
#   alpha_l  = clamp(x @ w.T, 0, clip)          (identity if output layer)
#   n_l      = (alpha_l != 0)
#   n_{l-1}  = ones          (layer 1, static flag)
#            | (x != 0)      (default)
#            | explicit ref  (caller-provided)
#   grad     = [ (n_l^T @ n_{l-1}) * lr_coef / B ] * |w|
#   new_w    = where(|w| < r, -sign(w) * r, w)   (aliased onto w's buffer)
# ----------------------------------------------------------------------------
def _fused_forward_update_kernel(*refs, is_output_layer, clip, scale, r,
                                 mask_mode):
    if mask_mode == "explicit":
        x_ref, w_ref, mask_ref, alpha_ref, grad_ref, new_w_ref, n_l_ref = refs
    else:
        x_ref, w_ref, alpha_ref, grad_ref, new_w_ref, n_l_ref = refs
        mask_ref = None

    x = x_ref[...]                                    # (B, in)
    w = w_ref[...]                                    # (out, in)

    # Forward: contract last dims (no w.T relayout), f32 accumulation on MXU.
    z = lax.dot_general(x, w, dimension_numbers=(((1,), (1,)), ((), ())),
                        preferred_element_type=jnp.float32)   # (B, out)
    alpha = z if is_output_layer else jnp.clip(z, 0.0, clip)
    alpha_ref[...] = alpha.astype(alpha_ref.dtype)

    n_l = (alpha != 0).astype(jnp.float32)            # (B, out)
    n_l_ref[...] = n_l.astype(n_l_ref.dtype)

    # n_{l-1} * lr_coef / B   (scale folded in; built from resident data).
    if mask_mode == "ones":
        a_in = jnp.full(x.shape, scale, jnp.float32)              # layer 1
    elif mask_mode == "explicit":
        a_in = mask_ref[...].astype(jnp.float32) * scale
    else:  # "from_input": mask of the PRE-clamp input alpha_{l-1}
        a_in = jnp.where(x != 0, scale, jnp.float32(0.0))

    # mean_b[ outer(n_l[b], a_in[b]) ]  ==  contract over batch (no n_l.T).
    delta = lax.dot_general(n_l, a_in,
                            dimension_numbers=(((0,), (0,)), ((), ())),
                            preferred_element_type=jnp.float32)   # (out, in)

    abs_w = jnp.abs(w)
    grad_ref[...] = (delta * abs_w).astype(grad_ref.dtype)
    # NOTE: sign(0) == 0, so exactly-zero weights are left at 0 -- this matches
    # torch.sign semantics of the original module.
    new_w_ref[...] = jnp.where(abs_w < r, -jnp.sign(w) * r, w).astype(
        new_w_ref.dtype)


def self_optimizing_linear_forward(alpha_l_minus_1, w_l, *, is_output_layer=False,
                                   lr_coef=None, n_l_minus_1_activated=None,
                                   layer_index=None, clip=10.0, r=1e-5):
    """Functional JAX/Pallas version of SelfOptimizingLinear.forward.

    Returns alpha_l when lr_coef is None, otherwise
    (alpha_l, w_grad, new_w, n_l_activated). State mutation (self.w_l.grad and
    the in-place w_l floor) is returned functionally; new_w is aliased onto the
    w_l input buffer via input_output_aliases.
    """
    B, in_f = alpha_l_minus_1.shape
    out_f = w_l.shape[0]

    if lr_coef is None:
        cost = pl.CostEstimate(
            flops=2 * B * in_f * out_f, transcendentals=0,
            bytes_accessed=4 * (B * in_f + out_f * in_f + B * out_f))
        return pl.pallas_call(
            functools.partial(_linear_clamp_kernel,
                              is_output_layer=is_output_layer, clip=clip),
            out_shape=jax.ShapeDtypeStruct((B, out_f), jnp.float32),
            in_specs=[_VMEM, _VMEM],
            out_specs=_VMEM,
            cost_estimate=cost,
        )(alpha_l_minus_1, w_l)

    # Pick the mask mode statically; avoid streaming masks from HBM when the
    # mask can be derived from data already resident in VMEM.
    if n_l_minus_1_activated is not None:
        mask_mode = "explicit"
        inputs = (alpha_l_minus_1, w_l, n_l_minus_1_activated)
        in_specs = [_VMEM, _VMEM, _VMEM]
    elif layer_index == 1:
        mask_mode = "ones"           # n_0_activated == ones: skip the mask.
        inputs = (alpha_l_minus_1, w_l)
        in_specs = [_VMEM, _VMEM]
    else:
        mask_mode = "from_input"     # (alpha_{l-1} != 0), pre-clamp input.
        inputs = (alpha_l_minus_1, w_l)
        in_specs = [_VMEM, _VMEM]

    mask_bytes = 4 * B * in_f if mask_mode == "explicit" else 0
    cost = pl.CostEstimate(
        flops=4 * B * in_f * out_f + 3 * out_f * in_f,
        transcendentals=0,
        bytes_accessed=4 * (B * in_f + 3 * out_f * in_f + 2 * B * out_f)
        + mask_bytes)

    out_shapes = (
        jax.ShapeDtypeStruct((B, out_f), jnp.float32),      # alpha_l
        jax.ShapeDtypeStruct((out_f, in_f), jnp.float32),   # w_l.grad
        jax.ShapeDtypeStruct((out_f, in_f), jnp.float32),   # new w_l (aliased)
        jax.ShapeDtypeStruct((B, out_f), jnp.float32),      # n_l_activated
    )

    # TODO(synk): for very large layers (e.g. 4096x4096 f32) whole-array VMEM
    # residency will not fit (esp. v7x 64 MiB); add a (out, in) grid with
    # generation-aware tile sizes + dimension_semantics=("parallel","parallel").
    alpha_l, grad, new_w, n_l = pl.pallas_call(
        functools.partial(_fused_forward_update_kernel,
                          is_output_layer=is_output_layer, clip=clip,
                          scale=float(lr_coef) / B, r=r, mask_mode=mask_mode),
        out_shape=out_shapes,
        in_specs=in_specs,
        out_specs=(_VMEM, _VMEM, _VMEM, _VMEM),
        input_output_aliases={1: 2},   # w_l input buffer -> new_w output
        cost_estimate=cost,
    )(*inputs)

    return alpha_l, grad, new_w, n_l


if __name__ == "__main__":
    # Lane-dense small shapes (multiples of 128 -> unmasked vector stores,
    # full MXU rows) consistent with the module's Linear semantics.
    B, IN_F, OUT_F = 128, 128, 128
    LR, R, CLIP = 0.01, 1e-5, 10.0

    key = jax.random.PRNGKey(0)
    kx, kw = jax.random.split(key)
    x = jax.random.normal(kx, (B, IN_F), jnp.float32)
    # reset_parameters(): init.normal_(w_l) -> standard normal.
    w = jax.random.normal(kw, (OUT_F, IN_F), jnp.float32)

    hi = lax.Precision.HIGHEST

    # ---- Plain forward path (lr_coef=None) ----------------------------------
    alpha = self_optimizing_linear_forward(x, w, is_output_layer=False)
    alpha = jax.block_until_ready(alpha)
    ref = jnp.clip(jnp.dot(x, w.T, precision=hi), 0.0, CLIP)
    assert jnp.allclose(alpha, ref, atol=1e-4, rtol=1e-5)

    # ---- Fused self-optimizing branch, first hidden layer (l == 1) ----------
    alpha2, grad, new_w, n_l = self_optimizing_linear_forward(
        x, w, is_output_layer=False, lr_coef=LR, layer_index=1)
    jax.block_until_ready((alpha2, grad, new_w, n_l))

    assert jnp.allclose(alpha2, ref, atol=1e-4, rtol=1e-5)
    # Build mask references from the kernel's own alpha (so boundary cases at
    # z == 0 are consistent), matching the module's definition exactly.
    n_l_ref = (alpha2 != 0).astype(jnp.float32)
    n_lm1_ref = jnp.ones((B, IN_F), jnp.float32)
    delta_ref = (jnp.einsum("bo,bi->oi", n_l_ref, n_lm1_ref * LR,
                            precision=hi) / B) * jnp.abs(w)
    new_w_ref = jnp.where(jnp.abs(w) < R, -jnp.sign(w) * R, w)
    assert jnp.allclose(n_l, n_l_ref)
    assert jnp.allclose(grad, delta_ref, atol=1e-6, rtol=1e-5)
    assert jnp.allclose(new_w, new_w_ref, atol=1e-7)

    # ---- Fused branch, deeper layer (mask derived from pre-clamp input) -----
    alpha3, grad3, new_w3, n_l3 = self_optimizing_linear_forward(
        x, w, is_output_layer=False, lr_coef=LR, layer_index=2)
    jax.block_until_ready((alpha3, grad3, new_w3, n_l3))
    n_lm1_ref3 = (x != 0).astype(jnp.float32)
    n_l_ref3 = (alpha3 != 0).astype(jnp.float32)
    delta_ref3 = (jnp.einsum("bo,bi->oi", n_l_ref3, n_lm1_ref3 * LR,
                             precision=hi) / B) * jnp.abs(w)
    assert jnp.allclose(alpha3, ref, atol=1e-4, rtol=1e-5)
    assert jnp.allclose(n_l3, n_l_ref3)
    assert jnp.allclose(grad3, delta_ref3, atol=1e-6, rtol=1e-5)
    assert jnp.allclose(new_w3, new_w_ref, atol=1e-7)

    # ---- Fused branch with an explicitly supplied n_{l-1} mask --------------
    explicit_mask = (jax.random.uniform(key, (B, IN_F)) > 0.5).astype(jnp.float32)
    alpha4, grad4, new_w4, n_l4 = self_optimizing_linear_forward(
        x, w, is_output_layer=False, lr_coef=LR,
        n_l_minus_1_activated=explicit_mask)
    jax.block_until_ready((alpha4, grad4, new_w4, n_l4))
    n_l_ref4 = (alpha4 != 0).astype(jnp.float32)
    delta_ref4 = (jnp.einsum("bo,bi->oi", n_l_ref4, explicit_mask * LR,
                             precision=hi) / B) * jnp.abs(w)
    assert jnp.allclose(grad4, delta_ref4, atol=1e-6, rtol=1e-5)

    # TODO(synk): in-place mutation of self.w_l / self.w_l.grad has no Pallas
    # analogue; the updated weight and grad are returned functionally (new_w is
    # aliased onto the w_l input buffer).
    print("KERNEL_OK")
</pallas_src>

<mosaic_0001>
module attributes {stable_mosaic.version = 11 : i64} {
  func.func @_linear_clamp_kernel(%arg0: memref<128x128xf32, #tpu.memory_space<vmem>>, %arg1: memref<128x128xf32, #tpu.memory_space<vmem>>, %arg2: memref<128x128xf32, #tpu.memory_space<vmem>>) attributes {dimension_semantics = [], scalar_prefetch = 0 : i64, scratch_operands = 0 : i64, tpu.core_type = #tpu.core_type<tc>} {
    %c0 = arith.constant 0 : index
    %c0_0 = arith.constant 0 : index
    %0 = vector.load %arg0[%c0, %c0_0] : memref<128x128xf32, #tpu.memory_space<vmem>>, vector<128x128xf32>
    %c0_1 = arith.constant 0 : index
    %c0_2 = arith.constant 0 : index
    %1 = vector.load %arg1[%c0_1, %c0_2] : memref<128x128xf32, #tpu.memory_space<vmem>>, vector<128x128xf32>
    %cst = arith.constant dense<0.000000e+00> : vector<128x128xf32>
    %2 = tpu.matmul %0, %1, %cst {dimension_numbers = #tpu.dot_dimension_numbers<[1], [1], [0], [0], [0, 0, 1, 0], [], []>} : vector<128x128xf32>, vector<128x128xf32>, vector<128x128xf32> -> vector<128x128xf32>
    %cst_3 = arith.constant 0.000000e+00 : f32
    %cst_4 = arith.constant 1.000000e+01 : f32
    %3 = vector.broadcast %cst_3 : f32 to vector<128x128xf32>
    %4 = arith.maximumf %3, %2 : vector<128x128xf32>
    %5 = vector.broadcast %cst_4 : f32 to vector<128x128xf32>
    %6 = arith.minimumf %5, %4 : vector<128x128xf32>
    %c0_5 = arith.constant 0 : index
    %c0_6 = arith.constant 0 : index
    %7 = vector.load %arg2[%c0_5, %c0_6] : memref<128x128xf32, #tpu.memory_space<vmem>>, vector<128x128xf32>
    tpu.vector_store %arg2[%c0_5, %c0_6], %6 {strides = array<i32>} : memref<128x128xf32, #tpu.memory_space<vmem>>, vector<128x128xf32>,
    return
  }
}

</mosaic_0001>

<bundles_post_ra>
// kernel: tpu_custom_call.1
= control target key start
LH: loop header
LB: loop body
LE: loop exit
PB: predicated region body
PF: predicated region fallthrough
CT: control target
= control target key end

     0   :  { %7 = vsyncpa [#allocation3], 0  ;;  %s512_s0 = inlined_call_operand.hbm [shape: f32[128,128], index: 0, kind: input, shape index: {}]   ;;  %s513_s1 = inlined_call_operand.hbm [shape: f32[128,128], index: 1, kind: input, shape index: {}]   ;;  %s514_s2 = inlined_call_operand.hbm [shape: f32[128,128], index: 2, kind: output, shape index: {}]  }
   0x1   :  { %8 = vsyncpa [#allocation6], 0 }
   0x2   :  { %9 = vsyncpa [#allocation4], 0  ;;  %s474_s9 = smov [#allocation2]  }
   0x3   :  { %s15_s10 = sshll.u32 %s474_s9, 4  ;;  %s16_s10 = int_to_ptr.vmem [resolvable:$true] %s15_s10 }
   0x4   :  { %s416_s11 = scalar_lea.vmem %s16_s10, 2048  ;;  %p421_p1 = scmp.lt.s32.totalorder %s16_s10, %s16_s10 }
   0x5   :  { %p417_p0 = scmp.ne.s32.totalorder %s16_s10, %s416_s11  ;;  %p422_p2 = scmp.lt.s32.totalorder %s416_s11, %s416_s11 }
   0x7   :  { %p423_p3 = por %p422_p2, %p421_p1 }
   0x9   :  { %p424_p4 = pnand %p423_p3, %p417_p0 }
   0xb   :  { %427 = shalt.err (!%p424_p4)
}
   0xc   :  { %s475_s12 = smov 128   ;;  %s476_s13 = smov 8  }
   0xd   :  { %21 = dma.hbm_to_vmem [thread:$0]  %s512_s0, 2048, %s16_s10, [#allocation3], %s475_s12, %s475_s12, %s476_s13  }
   0xe   :  { %s477_s16 = smov [#allocation5]  }
   0xf   :  { %s27_s17 = sshll.u32 %s477_s16, 4  ;;  %s28_s17 = int_to_ptr.vmem [resolvable:$true] %s27_s17 }
  0x10   :  { %s436_s18 = scalar_lea.vmem %s28_s17, 2048  ;;  %p441_p6 = scmp.lt.s32.totalorder %s28_s17, %s28_s17 }
  0x11   :  { %p437_p5 = scmp.ne.s32.totalorder %s28_s17, %s436_s18  ;;  %p442_p7 = scmp.lt.s32.totalorder %s436_s18, %s436_s18 }
  0x13   :  { %p443_p8 = por %p442_p7, %p441_p6 }
  0x15   :  { %p444_p9 = pnand %p443_p8, %p437_p5 }
  0x17   :  { %447 = shalt.err (!%p444_p9)
}
  0x18   :  { %33 = dma.hbm_to_vmem [thread:$0]  %s513_s1, 2048, %s28_s17, [#allocation6], %s475_s12, %s475_s12, %s476_s13  }
  0x19   :  { %468 = dma.done.wait [#allocation3], 2048  }
  0x1a   :  { %469 = vsyncadd [#allocation3], 4294965248 }
  0x1b   :  { %470 = dma.done.wait [#allocation6], 2048  }
  0x1c   :  { %471 = vsyncadd [#allocation6], 4294965248  ;;  %v71_v0 = vld [vmem:[#allocation5 + $0x78] sm:$0xff]  ;;  %v70_v1 = vld [vmem:[#allocation5 + $0x70] sm:$0xff]  ;;  %s478_s0 = smov [#allocation7]  }
  0x1d   :  { %315 = vmatprep.subr.mxu0 %v71_v0  ;;  %371 = vmatprep.subr.mxu1 %v71_v0  ;;  %v69_v2 = vld [vmem:[#allocation5 + $0x68] sm:$0xff]  ;;  %v40_v3 = vld [vmem:[#allocation2] sm:$0xff]  ;;  %v67_v6 = vld [vmem:[#allocation5 + $0x58] sm:$0xff]  ;;  %s270_s1 = sshll.u32 %s478_s0, 4  ;;  %s271_s1 = int_to_ptr.vmem [resolvable:$true] %s270_s1 }
  0x1e   :  { %316 = vmatpush3.xpose.msra.mxu0 %v71_v0  ;;  %387 = vmatpush3.xpose.msra.mxu1 %v71_v0  ;;  %v48_v4 = vld [vmem:[#allocation2 + $0x40] sm:$0xff]  ;;  %v66_v7 = vld [vmem:[#allocation5 + $0x50] sm:$0xff]  ;;  %v65_v8 = vld [vmem:[#allocation5 + $0x48] sm:$0xff]  ;;  %s448_s21 = scalar_lea.vmem %s271_s1, 2048  ;;  %p453_p11 = scmp.lt.s32.totalorder %s271_s1, %s271_s1 }
  0x1f   :  { %317 = vmatprep.subr.mxu0 %v70_v1  ;;  %372 = vmatprep.subr.mxu1 %v70_v1  ;;  %v68_v5 = vld [vmem:[#allocation5 + $0x60] sm:$0xff]  ;;  %v63_v10 = vld [vmem:[#allocation5 + $0x38] sm:$0xff]  ;;  %v62_v11 = vld [vmem:[#allocation5 + $0x30] sm:$0xff]  ;;  %p449_p10 = scmp.ne.s32.totalorder %s271_s1, %s448_s21  ;;  %p454_p12 = scmp.lt.s32.totalorder %s448_s21, %s448_s21 }
  0x20   :  { %347 = vmatprep.mubr.f32.mxu0 %v40_v3  ;;  %359 = vmatprep.mubr.f32.mxu1 %v48_v4  ;;  %v64_v9 = vld [vmem:[#allocation5 + $0x40] sm:$0xff]  ;;  %v61_v12 = vld [vmem:[#allocation5 + $0x28] sm:$0xff]  ;;  %v59_v14 = vld [vmem:[#allocation5 + $0x18] sm:$0xff] }
  0x21   :  { %v60_v13 = vld [vmem:[#allocation5 + $0x20] sm:$0xff]  ;;  %v58_v15 = vld [vmem:[#allocation5 + $0x10] sm:$0xff]  ;;  %v57_v16 = vld [vmem:[#allocation5 + $0x8] sm:$0xff]  ;;  %p455_p13 = por %p454_p12, %p453_p11 }
  0x22   :  { %318 = vmatpush3.xpose.msra.mxu0 %v70_v1  ;;  %388 = vmatpush3.xpose.msra.mxu1 %v70_v1  ;;  %v56_v17 = vld [vmem:[#allocation5] sm:$0xff]  ;;  %v41_v18 = vld [vmem:[#allocation2 + $0x8] sm:$0xff]  ;;  %v42_v20 = vld [vmem:[#allocation2 + $0x10] sm:$0xff] }
  0x23   :  { %319 = vmatprep.subr.mxu0 %v69_v2  ;;  %373 = vmatprep.subr.mxu1 %v69_v2  ;;  %v49_v19 = vld [vmem:[#allocation2 + $0x48] sm:$0xff]  ;;  %v50_v21 = vld [vmem:[#allocation2 + $0x50] sm:$0xff]  ;;  %v43_v22 = vld [vmem:[#allocation2 + $0x18] sm:$0xff]  ;;  %p456_p0 = pnand %p455_p13, %p449_p10 }
  0x24   :  { %v51_v23 = vld [vmem:[#allocation2 + $0x58] sm:$0xff]  ;;  %v44_v24 = vld [vmem:[#allocation2 + $0x20] sm:$0xff]  ;;  %v45_v26 = vld [vmem:[#allocation2 + $0x28] sm:$0xff] }
  0x25   :  { %v52_v25 = vld [vmem:[#allocation2 + $0x60] sm:$0xff]  ;;  %v53_v27 = vld [vmem:[#allocation2 + $0x68] sm:$0xff]  ;;  %v46_v28 = vld [vmem:[#allocation2 + $0x30] sm:$0xff] }
  0x26   :  { %320 = vmatpush3.xpose.msra.mxu0 %v69_v2  ;;  %389 = vmatpush3.xpose.msra.mxu1 %v69_v2  ;;  %v54_v29 = vld [vmem:[#allocation2 + $0x70] sm:$0xff]  ;;  %v47_v30 = vld [vmem:[#allocation2 + $0x38] sm:$0xff] }
  0x27   :  { %321 = vmatprep.subr.mxu0 %v68_v5  ;;  %374 = vmatprep.subr.mxu1 %v68_v5  ;;  %v55_v31 = vld [vmem:[#allocation2 + $0x78] sm:$0xff] }
  0x2a   :  { %322 = vmatpush3.xpose.msra.mxu0 %v68_v5  ;;  %390 = vmatpush3.xpose.msra.mxu1 %v68_v5 }
  0x2b   :  { %323 = vmatprep.subr.mxu0 %v67_v6  ;;  %375 = vmatprep.subr.mxu1 %v67_v6 }
  0x2e   :  { %324 = vmatpush3.xpose.msra.mxu0 %v67_v6  ;;  %391 = vmatpush3.xpose.msra.mxu1 %v67_v6 }
  0x2f   :  { %325 = vmatprep.subr.mxu0 %v66_v7  ;;  %376 = vmatprep.subr.mxu1 %v66_v7 }
  0x32   :  { %326 = vmatpush3.xpose.msra.mxu0 %v66_v7  ;;  %392 = vmatpush3.xpose.msra.mxu1 %v66_v7 }
  0x33   :  { %327 = vmatprep.subr.mxu0 %v65_v8  ;;  %377 = vmatprep.subr.mxu1 %v65_v8 }
  0x36   :  { %328 = vmatpush3.xpose.msra.mxu0 %v65_v8  ;;  %393 = vmatpush3.xpose.msra.mxu1 %v65_v8 }
  0x37   :  { %329 = vmatprep.subr.mxu0 %v64_v9  ;;  %378 = vmatprep.subr.mxu1 %v64_v9 }
  0x3a   :  { %330 = vmatpush3.xpose.msra.mxu0 %v64_v9  ;;  %394 = vmatpush3.xpose.msra.mxu1 %v64_v9 }
  0x3b   :  { %331 = vmatprep.subr.mxu0 %v63_v10  ;;  %379 = vmatprep.subr.mxu1 %v63_v10 }
  0x3e   :  { %332 = vmatpush3.xpose.msra.mxu0 %v63_v10  ;;  %395 = vmatpush3.xpose.msra.mxu1 %v63_v10 }
  0x3f   :  { %333 = vmatprep.subr.mxu0 %v62_v11  ;;  %380 = vmatprep.subr.mxu1 %v62_v11 }
  0x42   :  { %334 = vmatpush3.xpose.msra.mxu0 %v62_v11  ;;  %396 = vmatpush3.xpose.msra.mxu1 %v62_v11 }
  0x43   :  { %335 = vmatprep.subr.mxu0 %v61_v12  ;;  %381 = vmatprep.subr.mxu1 %v61_v12 }
  0x46   :  { %336 = vmatpush3.xpose.msra.mxu0 %v61_v12  ;;  %397 = vmatpush3.xpose.msra.mxu1 %v61_v12 }
  0x47   :  { %337 = vmatprep.subr.mxu0 %v60_v13  ;;  %382 = vmatprep.subr.mxu1 %v60_v13 }
  0x4a   :  { %338 = vmatpush3.xpose.msra.mxu0 %v60_v13  ;;  %398 = vmatpush3.xpose.msra.mxu1 %v60_v13 }
  0x4b   :  { %339 = vmatprep.subr.mxu0 %v59_v14  ;;  %383 = vmatprep.subr.mxu1 %v59_v14 }
  0x4e   :  { %340 = vmatpush3.xpose.msra.mxu0 %v59_v14  ;;  %399 = vmatpush3.xpose.msra.mxu1 %v59_v14 }
  0x4f   :  { %341 = vmatprep.subr.mxu0 %v58_v15  ;;  %384 = vmatprep.subr.mxu1 %v58_v15 }
  0x52   :  { %342 = vmatpush3.xpose.msra.mxu0 %v58_v15  ;;  %400 = vmatpush3.xpose.msra.mxu1 %v58_v15 }
  0x53   :  { %343 = vmatprep.subr.mxu0 %v57_v16  ;;  %385 = vmatprep.subr.mxu1 %v57_v16 }
  0x56   :  { %344 = vmatpush3.xpose.msra.mxu0 %v57_v16  ;;  %401 = vmatpush3.xpose.msra.mxu1 %v57_v16 }
  0x57   :  { %345 = vmatprep.subr.mxu0 %v56_v17  ;;  %386 = vmatprep.subr.mxu1 %v56_v17 }
  0x5a   :  { %346 = vmatpush3.xpose.msra.mxu0 %v56_v17  ;;  %402 = vmatpush3.xpose.msra.mxu1 %v56_v17 }
  0x5d   :  { %348 = vmatmul.mubr.f32.vlgmr.msra.gmra.mxu0 %v41_v18  ;;  %360 = vmatmul.mubr.f32.vlgmr.msra.gmra.mxu1 %v49_v19 }
  0x5e   :  { %350 = vmatprep.mubr.f32.mxu0 %v42_v20  ;;  %362 = vmatprep.mubr.f32.mxu1 %v50_v21 }
  0x61   :  { %351 = vmatmul.mubr.f32.gmra.mxu0 %v43_v22  ;;  %363 = vmatmul.mubr.f32.gmra.mxu1 %v51_v23 }
  0x62   :  { %353 = vmatprep.mubr.f32.mxu0 %v44_v24  ;;  %365 = vmatprep.mubr.f32.mxu1 %v52_v25 }
  0x65   :  { %354 = vmatmul.mubr.f32.gmra.mxu0 %v45_v26  ;;  %366 = vmatmul.mubr.f32.gmra.mxu1 %v53_v27 }
  0x66   :  { %356 = vmatprep.mubr.f32.mxu0 %v46_v28  ;;  %368 = vmatprep.mubr.f32.mxu1 %v54_v29 }
  0x69   :  { %357 = vmatmul.mubr.f32.gmra.mxu0 %v47_v30  ;;  %369 = vmatmul.mubr.f32.gmra.mxu1 %v55_v31 }
 0x11d   :  { %v349_v32 = vpop.f32.mrf.mxu0  ;;  %v361_v33 = vpop.f32.mrf.mxu1 }
 0x11e   :  { %v218_v34 = vmax.f32 %v349_v32, 0.0  ;;  %v226_v35 = vmax.f32 %v361_v33, 0.0 }
 0x11f   :  { %v138_v36 = vpop.f32.mrf.mxu0  ;;  %v178_v37 = vpop.f32.mrf.mxu1 }
 0x120   :  { %v234_v38 = vmin.f32 %v218_v34, 10.0  ;;  %v242_v39 = vmin.f32 %v226_v35, 10.0  ;;  %v217_v40 = vmax.f32 %v138_v36, 0.0  ;;  %v225_v41 = vmax.f32 %v178_v37, 0.0 }
 0x121   :  { %v352_v42 = vpop.f32.mrf.mxu0  ;;  %v364_v43 = vpop.f32.mrf.mxu1 }
 0x122   :  { %250 = vst [vmem:[#allocation7 + $0x8] sm:$0xff] %v234_v38  ;;  %258 = vst [vmem:[#allocation7 + $0x48] sm:$0xff] %v242_v39  ;;  %v233_v44 = vmin.f32 %v217_v40, 10.0  ;;  %v241_v45 = vmin.f32 %v225_v41, 10.0  ;;  %v220_v46 = vmax.f32 %v352_v42, 0.0  ;;  %v228_v47 = vmax.f32 %v364_v43, 0.0 }
 0x123   :  { %v148_v48 = vpop.f32.mrf.mxu0  ;;  %v188_v49 = vpop.f32.mrf.mxu1 }
 0x124   :  { %249 = vst [vmem:[#allocation7] sm:$0xff] %v233_v44  ;;  %257 = vst [vmem:[#allocation7 + $0x40] sm:$0xff] %v241_v45  ;;  %v236_v50 = vmin.f32 %v220_v46, 10.0  ;;  %v244_v51 = vmin.f32 %v228_v47, 10.0  ;;  %v219_v52 = vmax.f32 %v148_v48, 0.0  ;;  %v227_v53 = vmax.f32 %v188_v49, 0.0 }
 0x125   :  { %v355_v54 = vpop.f32.mrf.mxu0  ;;  %v367_v55 = vpop.f32.mrf.mxu1 }
 0x126   :  { %252 = vst [vmem:[#allocation7 + $0x18] sm:$0xff] %v236_v50  ;;  %260 = vst [vmem:[#allocation7 + $0x58] sm:$0xff] %v244_v51  ;;  %v235_v56 = vmin.f32 %v219_v52, 10.0  ;;  %v243_v57 = vmin.f32 %v227_v53, 10.0  ;;  %v222_v58 = vmax.f32 %v355_v54, 0.0  ;;  %v230_v59 = vmax.f32 %v367_v55, 0.0 }
 0x127   :  { %v158_v60 = vpop.f32.mrf.mxu0  ;;  %v198_v61 = vpop.f32.mrf.mxu1 }
 0x128   :  { %251 = vst [vmem:[#allocation7 + $0x10] sm:$0xff] %v235_v56  ;;  %259 = vst [vmem:[#allocation7 + $0x50] sm:$0xff] %v243_v57  ;;  %v238_v62 = vmin.f32 %v222_v58, 10.0  ;;  %v246_v63 = vmin.f32 %v230_v59, 10.0  ;;  %v221_v0 = vmax.f32 %v158_v60, 0.0  ;;  %v229_v1 = vmax.f32 %v198_v61, 0.0 }
 0x129   :  { %v358_v2 = vpop.f32.mrf.mxu0  ;;  %v370_v3 = vpop.f32.mrf.mxu1 }
 0x12a   :  { %254 = vst [vmem:[#allocation7 + $0x28] sm:$0xff] %v238_v62  ;;  %262 = vst [vmem:[#allocation7 + $0x68] sm:$0xff] %v246_v63  ;;  %v237_v4 = vmin.f32 %v221_v0, 10.0  ;;  %v245_v5 = vmin.f32 %v229_v1, 10.0  ;;  %v224_v6 = vmax.f32 %v358_v2, 0.0  ;;  %v232_v7 = vmax.f32 %v370_v3, 0.0 }
 0x12b   :  { %v168_v8 = vpop.f32.mrf.mxu0  ;;  %v208_v9 = vpop.f32.mrf.mxu1 }
 0x12c   :  { %253 = vst [vmem:[#allocation7 + $0x20] sm:$0xff] %v237_v4  ;;  %261 = vst [vmem:[#allocation7 + $0x60] sm:$0xff] %v245_v5  ;;  %v240_v10 = vmin.f32 %v224_v6, 10.0  ;;  %v248_v11 = vmin.f32 %v232_v7, 10.0  ;;  %v223_v12 = vmax.f32 %v168_v8, 0.0  ;;  %v231_v13 = vmax.f32 %v208_v9, 0.0 }
 0x12e   :  { %256 = vst [vmem:[#allocation7 + $0x38] sm:$0xff] %v240_v10  ;;  %264 = vst [vmem:[#allocation7 + $0x78] sm:$0xff] %v248_v11  ;;  %v239_v14 = vmin.f32 %v223_v12, 10.0  ;;  %v247_v15 = vmin.f32 %v231_v13, 10.0 }
 0x130   :  { %255 = vst [vmem:[#allocation7 + $0x30] sm:$0xff] %v239_v14  ;;  %263 = vst [vmem:[#allocation7 + $0x70] sm:$0xff] %v247_v15 }
 0x131   :  { %459 = shalt.err (!%p456_p0)
}
 0x132   :  { %276 = dma.vmem_to_hbm [thread:$0]  %s271_s1, 2048, %s514_s2, [#allocation4], %s475_s12, %s475_s12, %s476_s13  }
 0x133   :  { %472 = dma.done.wait [#allocation4], 2048  }
 0x134   :  { %473 = vsyncadd [#allocation4], 4294965248 }
 0x135   :  { %280 = vsyncpa [#allocation3], 1 }
 0x136   :  { %281 = vsyncpa [#allocation6], 1 }
 0x137   :  { %282 = vsyncpa [#allocation4], 1 }

</bundles_post_ra>
